<compile_context>
chip_gen: v7x
topology: tpu7x:2x2x1
jax: 0.10.0
libtpu: 0.0.40
codegen_flags: <defaults>
</compile_context>

<pallas_src>
import jax
import jax.numpy as jnp
from jax import lax
from jax.experimental import pallas as pl
from jax.experimental.pallas import tpu as pltpu


def _round_up(x, m):
    return (x + m - 1) // m * m


def _linear_relu_kernel(x_ref, w_ref, b_ref, o_ref):
    # x_ref: (tm, K)   w_ref: (tn, K)  (PyTorch (d_out, d_model) layout, no transpose)
    # MXU matmul contracting K of x with K of w -> (tm, tn), f32 accumulate.
    y = lax.dot_general(
        x_ref[...],
        w_ref[...],
        dimension_numbers=(((1,), (1,)), ((), ())),
        preferred_element_type=jnp.float32,
    )
    y = y + b_ref[...]                      # (tm, tn) + (1, tn) broadcast (VPU epilogue)
    o_ref[...] = jnp.maximum(y, 0.0).astype(o_ref.dtype)


def linear_layers_forward(x, weight, bias, *, tm_max=512, tn_max=512):
    """Equivalent of Linear_layers.forward.

    x:      (..., d_model)
    weight: (d_out, d_model)   -- PyTorch nn.Linear convention (used as stored)
    bias:   (d_out,)
    returns (..., d_out)
    """
    *lead, d_model = x.shape
    d_out = weight.shape[0]
    m = 1
    for s in lead:
        m *= s

    x2d = x.reshape(m, d_model)

    # ---- Tile sizing -------------------------------------------------------
    # M tile: multiple of 8 sublanes.  N tile: multiple of 128 lanes so the
    # output stores are lane-dense (unmasked vst).  d_model stays resident.
    tm = min(tm_max, _round_up(m, 8))
    tn = min(tn_max, _round_up(d_out, 128))
    m_pad = _round_up(m, tm)
    n_pad = _round_up(d_out, tn)

    # ---- Zero padding (padded rows/cols contribute nothing, sliced off later)
    if m_pad != m:
        x2d = jnp.pad(x2d, ((0, m_pad - m), (0, 0)))
    w = weight
    b = bias
    if n_pad != d_out:
        w = jnp.pad(w, ((0, n_pad - d_out), (0, 0)))
        b = jnp.pad(b, (0, n_pad - d_out))
    b2d = b.reshape(1, n_pad)

    grid_n = n_pad // tn
    grid_m = m_pad // tm

    # VMEM budget: double-buffered tiles + margin; clamp to 64 MiB (v7x safe).
    itemsize = jnp.dtype(x.dtype).itemsize
    tile_bytes = 2 * (tm * d_model + tn * d_model + tm * tn + tn) * itemsize
    vmem_limit = int(min(max(tile_bytes + (4 << 20), 16 << 20), 64 << 20))

    cost = pl.CostEstimate(
        flops=2 * m_pad * d_model * n_pad,
        transcendentals=0,
        bytes_accessed=itemsize
        * (m_pad * d_model + n_pad * d_model + n_pad + m_pad * n_pad),
    )

    out2d = pl.pallas_call(
        _linear_relu_kernel,
        out_shape=jax.ShapeDtypeStruct((m_pad, n_pad), x.dtype),
        grid_spec=pltpu.PrefetchScalarGridSpec(
            num_scalar_prefetch=0,
            # N outer, M inner: weight tile (depends only on j) is reused
            # across all M tiles before moving to the next column block.
            grid=(grid_n, grid_m),
            in_specs=[
                pl.BlockSpec((tm, d_model), lambda j, i: (i, 0)),  # x
                pl.BlockSpec((tn, d_model), lambda j, i: (j, 0)),  # weight (stored layout)
                pl.BlockSpec((1, tn), lambda j, i: (0, j)),        # bias
            ],
            out_specs=pl.BlockSpec((tm, tn), lambda j, i: (i, j)),
        ),
        compiler_params=pltpu.CompilerParams(
            dimension_semantics=("parallel", "parallel"),
            vmem_limit_bytes=vmem_limit,
        ),
        cost_estimate=cost,
    )(x2d, w, b2d)

    out2d = out2d[:m, :d_out]
    return out2d.reshape(*lead, d_out)


if __name__ == "__main__":
    key = jax.random.PRNGKey(0)
    k_x, k_w, k_b = jax.random.split(key, 3)

    batch, seq, d_model, d_out = 2, 8, 32, 64

    # Deterministic synthetic parameters (shapes match nn.Linear(d_model, d_out)).
    x = jax.random.normal(k_x, (batch, seq, d_model), dtype=jnp.float32)
    bound = 1.0 / (d_model ** 0.5)
    weight = jax.random.uniform(k_w, (d_out, d_model), jnp.float32, -bound, bound)
    bias = jax.random.uniform(k_b, (d_out,), jnp.float32, -bound, bound)

    out = linear_layers_forward(x, weight, bias)
    out = jax.block_until_ready(out)

    ref = jnp.maximum(jnp.einsum("bsd,od->bso", x, weight) + bias, 0.0)
    assert out.shape == (batch, seq, d_out)
    assert jnp.allclose(out, ref, atol=1e-5, rtol=1e-5)

    # Second check: force a multi-tile grid (grid_m=2, grid_n=2) at small
    # sizes to exercise the tiled / padded path and weight-tile reuse order.
    d_out2 = 256
    k_w2, k_b2 = jax.random.split(k_w)
    weight2 = jax.random.uniform(k_w2, (d_out2, d_model), jnp.float32, -bound, bound)
    bias2 = jax.random.uniform(k_b2, (d_out2,), jnp.float32, -bound, bound)
    out2 = jax.block_until_ready(
        linear_layers_forward(x, weight2, bias2, tm_max=8, tn_max=128)
    )
    ref2 = jnp.maximum(jnp.einsum("bsd,od->bso", x, weight2) + bias2, 0.0)
    assert out2.shape == (batch, seq, d_out2)
    assert jnp.allclose(out2, ref2, atol=1e-5, rtol=1e-5)

    print("KERNEL_OK")
</pallas_src>

<mosaic_0001>
module attributes {stable_mosaic.version = 11 : i64} {
  func.func @_linear_relu_kernel(%arg0: i32, %arg1: i32, %arg2: memref<16x32xf32, #tpu.memory_space<vmem>>, %arg3: memref<128x32xf32, #tpu.memory_space<vmem>>, %arg4: memref<1x128xf32, #tpu.memory_space<vmem>>, %arg5: memref<16x128xf32, #tpu.memory_space<vmem>>) attributes {dimension_semantics = [#tpu.dimension_semantics<parallel>, #tpu.dimension_semantics<parallel>], iteration_bounds = array<i64: 1, 1>, scalar_prefetch = 0 : i64, scratch_operands = 0 : i64, tpu.core_type = #tpu.core_type<tc>, window_params = [{transform_indices = @transform_0, window_bounds = array<i64: 16, 32>}, {transform_indices = @transform_1, window_bounds = array<i64: 128, 32>}, {transform_indices = @transform_2, window_bounds = array<i64: 1, 128>}, {transform_indices = @transform_3, window_bounds = array<i64: 16, 128>}]} {
    %c0 = arith.constant 0 : index
    %c0_0 = arith.constant 0 : index
    %0 = vector.load %arg2[%c0, %c0_0] : memref<16x32xf32, #tpu.memory_space<vmem>>, vector<16x32xf32>
    %c0_1 = arith.constant 0 : index
    %c0_2 = arith.constant 0 : index
    %1 = vector.load %arg3[%c0_1, %c0_2] : memref<128x32xf32, #tpu.memory_space<vmem>>, vector<128x32xf32>
    %cst = arith.constant dense<0.000000e+00> : vector<16x128xf32>
    %2 = tpu.matmul %0, %1, %cst {dimension_numbers = #tpu.dot_dimension_numbers<[1], [1], [0], [0], [0, 0, 1, 0], [], []>} : vector<16x32xf32>, vector<128x32xf32>, vector<16x128xf32> -> vector<16x128xf32>
    %c0_3 = arith.constant 0 : index
    %c0_4 = arith.constant 0 : index
    %3 = vector.load %arg4[%c0_3, %c0_4] : memref<1x128xf32, #tpu.memory_space<vmem>>, vector<1x128xf32>
    %4 = vector.broadcast %3 : vector<1x128xf32> to vector<16x128xf32>
    %5 = arith.addf %2, %4 : vector<16x128xf32>
    %cst_5 = arith.constant 0.000000e+00 : f32
    %6 = vector.broadcast %cst_5 : f32 to vector<16x128xf32>
    %7 = arith.maximumf %5, %6 : vector<16x128xf32>
    %c0_6 = arith.constant 0 : index
    %c0_7 = arith.constant 0 : index
    %8 = vector.load %arg5[%c0_6, %c0_7] : memref<16x128xf32, #tpu.memory_space<vmem>>, vector<16x128xf32>
    tpu.vector_store %arg5[%c0_6, %c0_7], %7 {strides = array<i32>} : memref<16x128xf32, #tpu.memory_space<vmem>>, vector<16x128xf32>,
    return
  }
  func.func @transform_0(%arg0: i32, %arg1: i32) -> (i32, i32) {
    %c0_i32 = arith.constant 0 : i32
    %c0_i32_0 = arith.constant 0 : i32
    return %arg1, %c0_i32 : i32, i32
  }
  func.func @transform_1(%arg0: i32, %arg1: i32) -> (i32, i32) {
    %c0_i32 = arith.constant 0 : i32
    %c0_i32_0 = arith.constant 0 : i32
    return %arg0, %c0_i32 : i32, i32
  }
  func.func @transform_2(%arg0: i32, %arg1: i32) -> (i32, i32) {
    %c0_i32 = arith.constant 0 : i32
    %c0_i32_0 = arith.constant 0 : i32
    return %c0_i32, %arg0 : i32, i32
  }
  func.func @transform_3(%arg0: i32, %arg1: i32) -> (i32, i32) {
    %c0_i32 = arith.constant 0 : i32
    return %arg1, %arg0 : i32, i32
  }
}

</mosaic_0001>

<bundles_post_ra>
// kernel: tpu_custom_call.1
= control target key start
LH: loop header
LB: loop body
LE: loop exit
PB: predicated region body
PF: predicated region fallthrough
CT: control target
= control target key end

     0   :  { %vm40_vm0 = vcmask 261120   ;;  %s469_s0 = inlined_call_operand.vmem [shape: f32[16,32], index: 0, kind: input, shape index: {}]   ;;  %s470_s1 = inlined_call_operand.vmem [shape: f32[128,32], index: 1, kind: input, shape index: {}]   ;;  %s471_s2 = inlined_call_operand.vmem [shape: f32[1,128], index: 2, kind: input, shape index: {}]   ;;  %s472_s3 = inlined_call_operand.hbm [shape: f32[16,128], index: 3, kind: output, shape index: {}]  }
   0x1   :  { %v17_v0 = vld [vmem:[%s470_s1] sm:$0xff]  ;;  %v18_v1 = vld [vmem:[%s470_s1 + $0x8] sm:$0xff]  ;;  %v19_v2 = vld [vmem:[%s470_s1 + $0x10] sm:$0xff] }
   0x2   :  { %v262_v3 = vpack.c.bf16 %v18_v1, %v17_v0  ;;  %vm371_vm1 = vmpackc.low %vm40_vm0, %vm40_vm0  ;;  %v20_v5 = vld [vmem:[%s470_s1 + $0x18] sm:$0xff]  ;;  %v15_v7 = vld [vmem:[%s469_s0] sm:$0xff] }
   0x3   :  { %v268_v6 = vpack.c.bf16 %v20_v5, %v19_v2  ;;  %v21_v8 = vld [vmem:[%s470_s1 + $0x20] sm:$0xff]  ;;  %v22_v9 = vld [vmem:[%s470_s1 + $0x28] sm:$0xff]  ;;  %259 = vmatprep.mubr.msk.f32.mxu0 %vm40_vm0, %v15_v7 }
   0x4   :  { %264 = vmatprep.subr.msk.bf16.mxu0 %vm371_vm1, %v262_v3 }
   0x5   :  { %267 = vmatpush3.bf16.xpose.msk.msra.mxu0 %vm371_vm1, %v262_v3 }
   0x6   :  { %270 = vmatprep.subr.msk.bf16.mxu0 %vm371_vm1, %v268_v6 }
   0x7   :  { %8 = vsyncpa [#allocation3], 0  ;;  %v274_v10 = vpack.c.bf16 %v22_v9, %v21_v8  ;;  %v23_v11 = vld [vmem:[%s470_s1 + $0x30] sm:$0xff]  ;;  %v24_v12 = vld [vmem:[%s470_s1 + $0x38] sm:$0xff] }
   0x8   :  { %v280_v13 = vpack.c.bf16 %v24_v12, %v23_v11  ;;  %v25_v14 = vld [vmem:[%s470_s1 + $0x40] sm:$0xff]  ;;  %v26_v15 = vld [vmem:[%s470_s1 + $0x48] sm:$0xff]  ;;  %v27_v17 = vld [vmem:[%s470_s1 + $0x50] sm:$0xff] }
   0x9   :  { %v286_v16 = vpack.c.bf16 %v26_v15, %v25_v14  ;;  %v28_v18 = vld [vmem:[%s470_s1 + $0x58] sm:$0xff]  ;;  %v29_v20 = vld [vmem:[%s470_s1 + $0x60] sm:$0xff]  ;;  %v30_v21 = vld [vmem:[%s470_s1 + $0x68] sm:$0xff] }
   0xa   :  { %v292_v19 = vpack.c.bf16 %v28_v18, %v27_v17  ;;  %v298_v22 = vpack.c.bf16 %v30_v21, %v29_v20  ;;  %v31_v23 = vld [vmem:[%s470_s1 + $0x70] sm:$0xff]  ;;  %v32_v24 = vld [vmem:[%s470_s1 + $0x78] sm:$0xff]  ;;  %v16_v26 = vld [vmem:[%s469_s0 + $0x8] sm:$0xff]  ;;  %s337_s1 = smov [#allocation2]  }
   0xb   :  { %v304_v25 = vpack.c.bf16 %v32_v24, %v31_v23  ;;  %v190_v27 = vld [vmem:[%s471_s2] ss:$0 sm:$0xff]  ;;  %s179_s23 = sshll.u32 %s337_s1, 4  ;;  %s180_s23 = int_to_ptr.vmem [resolvable:$true] %s179_s23 }
   0xc   :  { %s313_s24 = scalar_lea.vmem %s180_s23, 256  ;;  %p318_p1 = scmp.lt.s32.totalorder %s180_s23, %s180_s23 }
   0xd   :  { %273 = vmatpush3.bf16.xpose.msk.msra.mxu0 %vm371_vm1, %v268_v6  ;;  %p314_p0 = scmp.ne.s32.totalorder %s180_s23, %s313_s24  ;;  %p319_p2 = scmp.lt.s32.totalorder %s313_s24, %s313_s24 }
   0xe   :  { %276 = vmatprep.subr.msk.bf16.mxu0 %vm371_vm1, %v274_v10 }
   0xf   :  { %p320_p3 = por %p319_p2, %p318_p1 }
  0x11   :  { %p321_p4 = pnand %p320_p3, %p314_p0 }
  0x15   :  { %279 = vmatpush3.bf16.xpose.msk.msra.mxu0 %vm371_vm1, %v274_v10 }
  0x16   :  { %282 = vmatprep.subr.msk.bf16.mxu0 %vm371_vm1, %v280_v13 }
  0x1d   :  { %285 = vmatpush3.bf16.xpose.msk.msra.mxu0 %vm371_vm1, %v280_v13 }
  0x1e   :  { %288 = vmatprep.subr.msk.bf16.mxu0 %vm371_vm1, %v286_v16 }
  0x25   :  { %291 = vmatpush3.bf16.xpose.msk.msra.mxu0 %vm371_vm1, %v286_v16 }
  0x26   :  { %294 = vmatprep.subr.msk.bf16.mxu0 %vm371_vm1, %v292_v19 }
  0x2d   :  { %297 = vmatpush3.bf16.xpose.msk.msra.mxu0 %vm371_vm1, %v292_v19 }
  0x2e   :  { %300 = vmatprep.subr.msk.bf16.mxu0 %vm371_vm1, %v298_v22 }
  0x35   :  { %303 = vmatpush3.bf16.xpose.msk.msra.mxu0 %vm371_vm1, %v298_v22 }
  0x36   :  { %306 = vmatprep.subr.msk.bf16.mxu0 %vm371_vm1, %v304_v25 }
  0x3d   :  { %309 = vmatpush3.bf16.xpose.msk.msra.mxu0 %vm371_vm1, %v304_v25 }
  0x44   :  { %260 = vmatmul.mubr.msk.f32.vlgmr.msra.gmra.mrb[0].mxu0 %vm40_vm0, %v16_v26 }
 0x117   :  { %v261_v28 = vpop.f32.mrb[0].mxu0 }
 0x118   :  { %v167_v29 = vadd.f32 %v261_v28, %v190_v27  ;;  %v161_v30 = vpop.f32.mrb[1].mxu0 }
 0x119   :  { %v162_v31 = vadd.f32 %v190_v27, %v161_v30 }
 0x11a   :  { %v171_v32 = vmax.f32 %v167_v29, 0.0 }
 0x11b   :  { %v170_v33 = vmax.f32 %v162_v31, 0.0 }
 0x11c   :  { %173 = vst [vmem:[#allocation2 + $0x8] sm:$0xff] %v171_v32 }
 0x11d   :  { %172 = vst [vmem:[#allocation2] sm:$0xff] %v170_v33 }
 0x11e   :  { %324 = shalt.err (!%p321_p4)
}
 0x11f   :  { %s325_s25 = scalar_lea.hbm %s472_s3, 256 }
 0x120   :  { %p326_p5 = scmp.ne.s32.totalorder %s472_s3, %s325_s25  ;;  %p329_p6 = scmp.lt.u32.totalorder %s325_s25, %s472_s3 }
 0x122   :  { %p331_p7 = pnand %p329_p6, %p326_p5 }
 0x124   :  { %334 = shalt.err (!%p331_p7)
}
 0x125   :  { %s338_s30 = smov 128   ;;  %s339_s4 = smov 8  }
 0x126   :  { %185 = dma.vmem_to_hbm [thread:$0]  %s180_s23, 256, %s472_s3, [#allocation3], %s338_s30, %s338_s30, %s339_s4  }
 0x127   :  { %335 = dma.done.wait [#allocation3], 256  }
 0x128   :  { %336 = vsyncadd [#allocation3], 4294967040 }
 0x129   :  { %189 = vsyncpa [#allocation3], 1 }

</bundles_post_ra>
